<compile_context>
chip_gen: v5e
topology: v5e:2x2
jax: 0.10.0
libtpu: 0.0.40
codegen_flags: <defaults>
</compile_context>

<pallas_src>
import jax
import jax.numpy as jnp
from jax.experimental import pallas as pl
from jax.experimental.pallas import tpu as pltpu


def _round_up(x, m):
    return ((x + m - 1) // m) * m


def _make_kernel(offsets):
    """Kernel factory closing over the static row offsets of the 4 weight blocks."""
    o0, o1, o2, o3, o4 = offsets

    def kernel(s_ref, d_ref, t_ref, e_ref, w_ref, b_ref, o_ref):
        # s/d/t/e: (TB, feat_k) activation tiles streamed over the batch.
        # w: (d_in, Mpad) resident weight (constant block index -> DMA'd once).
        # b: (1, Mpad) f32 bias.  o: (TB, Mpad) lane-dense output tile.
        # The torch.cat is fused: 4 MXU dots against static row-slices of w
        # accumulate into one f32 accumulator.
        acc = jnp.dot(s_ref[...], w_ref[o0:o1, :], preferred_element_type=jnp.float32)
        acc = acc + jnp.dot(d_ref[...], w_ref[o1:o2, :], preferred_element_type=jnp.float32)
        acc = acc + jnp.dot(t_ref[...], w_ref[o2:o3, :], preferred_element_type=jnp.float32)
        acc = acc + jnp.dot(e_ref[...], w_ref[o3:o4, :], preferred_element_type=jnp.float32)
        acc = acc + b_ref[...]                        # f32 bias broadcast over batch
        o_ref[...] = jnp.maximum(acc, 0.0).astype(o_ref.dtype)

    return kernel


def message_function(src_mem, dst_mem, time_enc, edge_feat, weight, bias,
                     *, tile_b=None, out_dtype=None, return_padded=False):
    """Pallas equivalent of MessageFunction.forward.

    src_mem:  [B, memory_dim]
    dst_mem:  [B, memory_dim]
    time_enc: [B, time_dim]
    edge_feat:[B, edge_feat_dim]
    weight:   [input_dim, message_dim]   (transposed vs torch Linear.weight)
    bias:     [message_dim]
    returns:  [B, message_dim]           (out_dtype, default = src_mem.dtype)

    Inputs stream in their native dtype; pass bf16-resident arrays to halve
    HBM traffic (accumulation stays f32).
    """
    inputs = [src_mem, dst_mem, time_enc, edge_feat]
    B = int(src_mem.shape[0])
    feat_dims = [int(x.shape[1]) for x in inputs]
    d_in = sum(feat_dims)
    d_in_w, msg_dim = weight.shape
    assert d_in == d_in_w, (d_in, d_in_w)

    act_dtype = src_mem.dtype
    out_dtype = act_dtype if out_dtype is None else out_dtype
    act_itemsize = jnp.dtype(act_dtype).itemsize
    out_itemsize = jnp.dtype(out_dtype).itemsize

    # Static row offsets of the (virtual) concat inside the weight matrix.
    offs = [0]
    for f in feat_dims:
        offs.append(offs[-1] + f)

    # --- lane-dense output: zero-pad message dim to a multiple of 128 ---------
    msg_pad = _round_up(msg_dim, 128)
    w = weight.astype(act_dtype)                 # tiny, resident; cast once
    if msg_pad != msg_dim:
        w = jnp.pad(w, ((0, 0), (0, msg_pad - msg_dim)))
        bias_p = jnp.pad(bias, (0, msg_pad - msg_dim))
    else:
        bias_p = bias
    bias2d = bias_p.reshape(1, msg_pad).astype(jnp.float32)

    # --- batch tile: big enough to amortize per-step overhead, small enough ---
    # --- for VMEM, and >= 2 grid steps so v7x's 2 TensorCores both get work ---
    if tile_b is None:
        max_tile = 4096 if act_itemsize <= 2 else 2048
        tile = min(max_tile, max(8, _round_up(pl.cdiv(B, 2), 8)))
    else:
        tile = max(8, _round_up(int(tile_b), 8))
    grid = (pl.cdiv(B, tile),)
    # NOTE: no batch padding — Pallas masks the partial last block; rows are
    # independent so OOB garbage cannot contaminate valid output rows.

    # --- VMEM budget: double-buffered activation+output tiles + resident w/b --
    # Narrow feature blocks are lane-padded to 128 inside VMEM.
    act_block_bytes = sum(tile * _round_up(f, 128) * act_itemsize for f in feat_dims)
    out_block_bytes = tile * msg_pad * out_itemsize
    resident_bytes = d_in * msg_pad * act_itemsize + msg_pad * 4
    vmem_est = 2 * (act_block_bytes + out_block_bytes) + 2 * resident_bytes
    vmem_limit = int(min(max(_round_up(vmem_est, 1 << 20) + (4 << 20), 16 << 20),
                         64 << 20))

    in_specs = (
        # activations: tiled over batch, full feature extent (lanes)
        [pl.BlockSpec((tile, feat_dims[k]), lambda i: (i, 0)) for k in range(4)]
        # weight + bias: constant block index -> resident, DMA'd once
        + [pl.BlockSpec((d_in, msg_pad), lambda i: (0, 0)),
           pl.BlockSpec((1, msg_pad), lambda i: (0, 0))]
    )

    bytes_accessed = (
        sum(int(x.size) * act_itemsize for x in inputs)
        + int(w.size) * act_itemsize
        + int(bias2d.size) * 4
        + B * msg_pad * out_itemsize
    )
    cost = pl.CostEstimate(
        flops=2 * B * d_in * msg_pad,
        transcendentals=0,
        bytes_accessed=int(bytes_accessed),
    )

    out = pl.pallas_call(
        _make_kernel(tuple(offs)),
        out_shape=jax.ShapeDtypeStruct((B, msg_pad), out_dtype),
        grid_spec=pltpu.PrefetchScalarGridSpec(
            num_scalar_prefetch=0,
            grid=grid,
            in_specs=in_specs,
            out_specs=pl.BlockSpec((tile, msg_pad), lambda i: (i, 0)),
        ),
        compiler_params=pltpu.CompilerParams(
            dimension_semantics=("parallel",),
            vmem_limit_bytes=vmem_limit),
        cost_estimate=cost,
    )(*inputs, w, bias2d)

    if return_padded or msg_pad == msg_dim:
        return out
    # TODO(synk): keep message_dim a multiple of 128 at the model level (or use
    # return_padded=True) to avoid this extra read+write pass over the result.
    return out[:, :msg_dim]


if __name__ == "__main__":
    # Small shapes consistent with the module; batch chosen NOT divisible by
    # the tile so the masked partial-last-block path is exercised.
    batch = 12
    memory_dim = 32
    time_dim = 16
    edge_feat_dim = 16
    message_dim = 32
    input_dim = 2 * memory_dim + time_dim + edge_feat_dim  # 96

    key = jax.random.PRNGKey(0)
    k_src, k_dst, k_t, k_e, k_w, k_b = jax.random.split(key, 6)

    src_mem = jax.random.normal(k_src, (batch, memory_dim), dtype=jnp.float32)
    dst_mem = jax.random.normal(k_dst, (batch, memory_dim), dtype=jnp.float32)
    time_enc = jax.random.normal(k_t, (batch, time_dim), dtype=jnp.float32)
    edge_feat = jax.random.normal(k_e, (batch, edge_feat_dim), dtype=jnp.float32)

    # Deterministic Linear params, mimicking PyTorch's U(-1/sqrt(fan_in), 1/sqrt(fan_in)).
    bound = 1.0 / (input_dim ** 0.5)
    weight = jax.random.uniform(
        k_w, (input_dim, message_dim), minval=-bound, maxval=bound, dtype=jnp.float32)
    bias = jax.random.uniform(
        k_b, (message_dim,), minval=-bound, maxval=bound, dtype=jnp.float32)

    out = jax.block_until_ready(
        message_function(src_mem, dst_mem, time_enc, edge_feat, weight, bias))

    # Pure-JAX reference check (f32 path).
    x_ref = jnp.concatenate([src_mem, dst_mem, time_enc, edge_feat], axis=1)
    ref = jnp.maximum(x_ref @ weight + bias, 0.0)
    assert out.shape == (batch, message_dim)
    assert jnp.allclose(out, ref, atol=1e-5, rtol=1e-5)

    # bf16-resident inputs: streamed as-is (no wrapper casting of activations),
    # f32 accumulation/epilogue, bf16 output (looser tolerance).
    out_bf16 = jax.block_until_ready(
        message_function(src_mem.astype(jnp.bfloat16), dst_mem.astype(jnp.bfloat16),
                         time_enc.astype(jnp.bfloat16), edge_feat.astype(jnp.bfloat16),
                         weight, bias))
    assert out_bf16.dtype == jnp.bfloat16
    assert jnp.allclose(out_bf16.astype(jnp.float32), ref, atol=6e-2, rtol=6e-2)

    print("KERNEL_OK")
</pallas_src>

<mosaic_0001>
module attributes {stable_mosaic.version = 11 : i64} {
  func.func @kernel(%arg0: i32, %arg1: memref<8x32xf32, #tpu.memory_space<vmem>>, %arg2: memref<8x32xf32, #tpu.memory_space<vmem>>, %arg3: memref<8x16xf32, #tpu.memory_space<vmem>>, %arg4: memref<8x16xf32, #tpu.memory_space<vmem>>, %arg5: memref<96x128xf32, #tpu.memory_space<vmem>>, %arg6: memref<1x128xf32, #tpu.memory_space<vmem>>, %arg7: memref<8x128xf32, #tpu.memory_space<vmem>>) attributes {dimension_semantics = [#tpu.dimension_semantics<parallel>], iteration_bounds = array<i64: 2>, scalar_prefetch = 0 : i64, scratch_operands = 0 : i64, tpu.core_type = #tpu.core_type<tc>, window_params = [{transform_indices = @transform_0, window_bounds = array<i64: 8, 32>}, {transform_indices = @transform_1, window_bounds = array<i64: 8, 32>}, {transform_indices = @transform_2, window_bounds = array<i64: 8, 16>}, {transform_indices = @transform_3, window_bounds = array<i64: 8, 16>}, {pipeline_mode = #tpu.pipeline_mode<synchronous>, transform_indices = @transform_4, window_bounds = array<i64: 96, 128>}, {pipeline_mode = #tpu.pipeline_mode<synchronous>, transform_indices = @transform_5, window_bounds = array<i64: 1, 128>}, {transform_indices = @transform_6, window_bounds = array<i64: 8, 128>}]} {
    %c0 = arith.constant 0 : index
    %c0_0 = arith.constant 0 : index
    %0 = vector.load %arg1[%c0, %c0_0] : memref<8x32xf32, #tpu.memory_space<vmem>>, vector<8x32xf32>
    %c0_1 = arith.constant 0 : index
    %c0_2 = arith.constant 0 : index
    %1 = vector.load %arg5[%c0_1, %c0_2] : memref<96x128xf32, #tpu.memory_space<vmem>>, vector<32x128xf32>
    %cst = arith.constant dense<0.000000e+00> : vector<8x128xf32>
    %2 = tpu.matmul %0, %1, %cst {dimension_numbers = #tpu.dot_dimension_numbers<[1], [0], [0], [1], [0, 0, 1, 1], [], []>} : vector<8x32xf32>, vector<32x128xf32>, vector<8x128xf32> -> vector<8x128xf32>
    %c0_3 = arith.constant 0 : index
    %c0_4 = arith.constant 0 : index
    %3 = vector.load %arg2[%c0_3, %c0_4] : memref<8x32xf32, #tpu.memory_space<vmem>>, vector<8x32xf32>
    %c32 = arith.constant 32 : index
    %c0_5 = arith.constant 0 : index
    %4 = vector.load %arg5[%c32, %c0_5] : memref<96x128xf32, #tpu.memory_space<vmem>>, vector<32x128xf32>
    %cst_6 = arith.constant dense<0.000000e+00> : vector<8x128xf32>
    %5 = tpu.matmul %3, %4, %cst_6 {dimension_numbers = #tpu.dot_dimension_numbers<[1], [0], [0], [1], [0, 0, 1, 1], [], []>} : vector<8x32xf32>, vector<32x128xf32>, vector<8x128xf32> -> vector<8x128xf32>
    %6 = arith.addf %2, %5 : vector<8x128xf32>
    %c0_7 = arith.constant 0 : index
    %c0_8 = arith.constant 0 : index
    %7 = vector.load %arg3[%c0_7, %c0_8] : memref<8x16xf32, #tpu.memory_space<vmem>>, vector<8x16xf32>
    %c64 = arith.constant 64 : index
    %c0_9 = arith.constant 0 : index
    %8 = vector.load %arg5[%c64, %c0_9] : memref<96x128xf32, #tpu.memory_space<vmem>>, vector<16x128xf32>
    %cst_10 = arith.constant dense<0.000000e+00> : vector<8x128xf32>
    %9 = tpu.matmul %7, %8, %cst_10 {dimension_numbers = #tpu.dot_dimension_numbers<[1], [0], [0], [1], [0, 0, 1, 1], [], []>} : vector<8x16xf32>, vector<16x128xf32>, vector<8x128xf32> -> vector<8x128xf32>
    %10 = arith.addf %6, %9 : vector<8x128xf32>
    %c0_11 = arith.constant 0 : index
    %c0_12 = arith.constant 0 : index
    %11 = vector.load %arg4[%c0_11, %c0_12] : memref<8x16xf32, #tpu.memory_space<vmem>>, vector<8x16xf32>
    %c80 = arith.constant 80 : index
    %c0_13 = arith.constant 0 : index
    %12 = vector.load %arg5[%c80, %c0_13] : memref<96x128xf32, #tpu.memory_space<vmem>>, vector<16x128xf32>
    %cst_14 = arith.constant dense<0.000000e+00> : vector<8x128xf32>
    %13 = tpu.matmul %11, %12, %cst_14 {dimension_numbers = #tpu.dot_dimension_numbers<[1], [0], [0], [1], [0, 0, 1, 1], [], []>} : vector<8x16xf32>, vector<16x128xf32>, vector<8x128xf32> -> vector<8x128xf32>
    %14 = arith.addf %10, %13 : vector<8x128xf32>
    %c0_15 = arith.constant 0 : index
    %c0_16 = arith.constant 0 : index
    %15 = vector.load %arg6[%c0_15, %c0_16] : memref<1x128xf32, #tpu.memory_space<vmem>>, vector<1x128xf32>
    %16 = vector.broadcast %15 : vector<1x128xf32> to vector<8x128xf32>
    %17 = arith.addf %14, %16 : vector<8x128xf32>
    %cst_17 = arith.constant 0.000000e+00 : f32
    %18 = vector.broadcast %cst_17 : f32 to vector<8x128xf32>
    %19 = arith.maximumf %17, %18 : vector<8x128xf32>
    %c0_18 = arith.constant 0 : index
    %c0_19 = arith.constant 0 : index
    %20 = vector.load %arg7[%c0_18, %c0_19] : memref<8x128xf32, #tpu.memory_space<vmem>>, vector<8x128xf32>
    tpu.vector_store %arg7[%c0_18, %c0_19], %19 {strides = array<i32>} : memref<8x128xf32, #tpu.memory_space<vmem>>, vector<8x128xf32>,
    return
  }
  func.func @transform_0(%arg0: i32) -> (i32, i32) {
    %c0_i32 = arith.constant 0 : i32
    %c0_i32_0 = arith.constant 0 : i32
    return %arg0, %c0_i32 : i32, i32
  }
  func.func @transform_1(%arg0: i32) -> (i32, i32) {
    %c0_i32 = arith.constant 0 : i32
    %c0_i32_0 = arith.constant 0 : i32
    return %arg0, %c0_i32 : i32, i32
  }
  func.func @transform_2(%arg0: i32) -> (i32, i32) {
    %c0_i32 = arith.constant 0 : i32
    %c0_i32_0 = arith.constant 0 : i32
    return %arg0, %c0_i32 : i32, i32
  }
  func.func @transform_3(%arg0: i32) -> (i32, i32) {
    %c0_i32 = arith.constant 0 : i32
    %c0_i32_0 = arith.constant 0 : i32
    return %arg0, %c0_i32 : i32, i32
  }
  func.func @transform_4(%arg0: i32) -> (i32, i32) {
    %c0_i32 = arith.constant 0 : i32
    %c0_i32_0 = arith.constant 0 : i32
    %c0_i32_1 = arith.constant 0 : i32
    return %c0_i32, %c0_i32_0 : i32, i32
  }
  func.func @transform_5(%arg0: i32) -> (i32, i32) {
    %c0_i32 = arith.constant 0 : i32
    %c0_i32_0 = arith.constant 0 : i32
    %c0_i32_1 = arith.constant 0 : i32
    return %c0_i32, %c0_i32_0 : i32, i32
  }
  func.func @transform_6(%arg0: i32) -> (i32, i32) {
    %c0_i32 = arith.constant 0 : i32
    %c0_i32_0 = arith.constant 0 : i32
    return %arg0, %c0_i32 : i32, i32
  }
}

</mosaic_0001>

<bundles_post_ra>
// kernel: tpu_custom_call.1
= control target key start
LH: loop header
LB: loop body
LE: loop exit
PB: predicated region body
PF: predicated region fallthrough
CT: control target
= control target key end

     0   :  { %s1282_s0 = inlined_call_operand.hbm [shape: f32[12,32], index: 0, kind: input, shape index: {}]   ;;  %s1283_s1 = inlined_call_operand.hbm [shape: f32[12,32], index: 1, kind: input, shape index: {}]   ;;  %s1284_s2 = inlined_call_operand.hbm [shape: f32[12,16], index: 2, kind: input, shape index: {}]   ;;  %s1285_s3 = inlined_call_operand.hbm [shape: f32[12,16], index: 3, kind: input, shape index: {}]   ;;  %s1286_s4 = inlined_call_operand.hbm [shape: f32[96,128], index: 4, kind: input, shape index: {}]   ;;  %s1287_s5 = inlined_call_operand.vmem [shape: f32[1,128], index: 5, kind: input, shape index: {}]   ;;  %s1288_s6 = inlined_call_operand.hbm [shape: f32[12,128], index: 6, kind: output, shape index: {}]  }
   0x1   :  { %1294 = sst [smem:[#allocation20_spill]] %s1283_s1 }
   0x2   :  { %1295 = sst [smem:[#allocation21_spill]] %s1286_s4 }
   0x3   :  { %11 = vsyncpa [#allocation3], 0 }
   0x4   :  { %13 = vsyncpa [#allocation3 + $0x1], 0 }
   0x5   :  { %14 = vsyncpa [#allocation6], 0 }
   0x6   :  { %16 = vsyncpa [#allocation6 + $0x1], 0 }
   0x7   :  { %17 = vsyncpa [#allocation9], 0 }
   0x8   :  { %19 = vsyncpa [#allocation9 + $0x1], 0 }
   0x9   :  { %20 = vsyncpa [#allocation4], 0 }
   0xa   :  { %22 = vsyncpa [#allocation4 + $0x1], 0  ;;  %s1049_s21 = smov 0   ;;  %s1051_s22 = smov 0  }
   0xb   :  { %s1053_s23 = smov 0   ;;  %s1055_s24 = smov 0  }
   0xc LB: > { %1296 = sst [smem:[#allocation17_spill]] %s1005_s23  ;;  %s1070_s25 = sadd.s32 4294967295, %s1009_s24   ;;  %s1009_s24 = sphi %s1055_s24, %s1309_s24   ;;  %s1005_s23 = sphi %s1053_s23, %s1311_s23   ;;  %s1001_s22 = sphi %s1051_s22, %s1313_s22   ;;  %s997_s21 = sphi %s1049_s21, %s1312_s21  }
   0xd   : > { %s679_s26 = sadd.s32 4294967294, %s1009_s24   ;;  %p48_p0 = scmp.ne.s32.totalorder %s1001_s22, %s997_s21 }
   0xe   : > { %p49_p1 = scmp.eq.s32.totalorder %s1070_s25, 0  ;;  %p192_p2 = scmp.eq.s32.totalorder %s1070_s25, 1 }
   0xf   : > { %p198_p3 = scmp.eq.s32.totalorder %s679_s26, 1  ;;  %p680_p5 = scmp.ge.s32.totalorder %s1009_s24, 1 }
  0x10   : > { %p1079_p4 = por %p49_p1, %p48_p0  ;;  %p205_p7 = scmp.lt.s32.totalorder %s1009_s24, 3 }
  0x11   : > { %p1084_p6 = por %p198_p3, %p48_p0  ;;  %s1299_s4 = sld [smem:[#allocation21_spill]] }
  0x12   : > { %p1092_p8 = pnand %p680_p5, %p205_p7  ;;  %s1011_s9 = smov [#allocation10]  }
  0x13   : > { %s218_s10 = sshll.u32 %s1011_s9, 4  ;;  %s1102_s11 = sadd.s32 1, %s1009_s24   ;;  %s219_s10 = int_to_ptr.vmem [resolvable:$true] %s218_s10 }
  0x14   : > { %p720_p9 = pneg %p1092_p8  ;;  %1301 = sst [smem:[#allocation18_spill]] %s1102_s11 }
  0x15   : > { %s1012_s12 = smov 128   ;;  %s1013_s13 = smov 8  }
  0x16   : > { %p721_p10 = pnand %p720_p9, %p49_p1  ;;  %s32_s14 = ssub.s32 %s1009_s24, %s1102_s11 }
  0x17   : > { %s216_s7 = sshll.u32 %s1299_s4, 4  ;;  %s35_s15 = sadd.s32 1, %s1005_s23  ;;  %s217_s7 = int_to_ptr.hbm [resolvable:$true] %s216_s7 }
  0x18   : > { %723 = dma.hbm_to_vmem [thread:$0]  (!%p721_p10), %s217_s7, 1536, %s219_s10, [#allocation9], %s1012_s12, %s1012_s12, %s1013_s13  }
  0x19   : > { %p33_p12 = scmp.eq.s32.totalorder %s32_s14, 0  ;;  %p42_p13 = scmp.ne.s32.totalorder %s1005_s23, %s1001_s22 }
  0x1a   : > { %p43_p0 = scmp.eq.s32.totalorder %s1009_s24, 0  ;;  %p742_p3 = scmp.lt.s32.totalorder %s1009_s24, 2 }
  0x1b   : > { %s1112_s16 = scalar_select %p33_p12, %s1005_s23, %s35_s15  }
  0x1c   : > { %p44_p5 = por %p43_p0, %p42_p13  ;;  %p1116_p7 = por %p192_p2, %p42_p13 }
  0x1d   : > { %1302 = sst [smem:[#allocation19_spill]] %s1112_s16  ;;  %s1289_s18 = sand.u32 1, %s1005_s23  }
  0x1e   : > { %s1122_s19 = sshll.u32 %s1009_s24, 3  ;;  %s1126_s20 = sshll.u32 %s1289_s18, 3 }
  0x1f   : > { %p1128_p9 = pnand %p742_p3, %p44_p5  ;;  %s1290_s29 = sand.u32 1, %s1009_s24  }
  0x20   : > { %s1305_s1 = sld [smem:[#allocation20_spill]]  ;;  %s258_s10 = scalar_lea.vmem [#allocation5], %s1126_s20 }
  0x21   : > { %s266_s12 = sshll.u32 %s258_s10, 4  ;;  %s1140_s14 = scalar_lea.sflag [#allocation6], %s1290_s29  ;;  %s267_s12 = int_to_ptr.vmem [resolvable:$true] %s266_s12 }
  0x22   : > { %p815_p10 = pneg %p1128_p9 }
  0x26   : > { %s262_s9 = scalar_lea.hbm %s1305_s1, %s1122_s19  ;;  %s818_s10 = scalar_lea.hbm %s1305_s1, 16 }
  0x27   : > { %s264_s13 = sshll.u32 %s262_s9, 4  ;;  %s265_s13 = int_to_ptr.hbm [resolvable:$true] %s264_s13 }
  0x28   : > { %s811_s15 = sshra.s32 %s265_s13, 4  ;;  %s812_s15 = int_to_ptr.hbm [resolvable:$true] %s811_s15 }
  0x29   : > { %s813_s18 = scalar_lea.hbm %s812_s15, 8  ;;  %p819_p0 = scmp.lt.s32.totalorder %s812_s15, %s1305_s1 }
  0x2a   : > { %p814_p2 = scmp.ne.s32.totalorder %s812_s15, %s813_s18  ;;  %p820_p3 = scmp.lt.s32.totalorder %s818_s10, %s813_s18 }
  0x2c   : > { %p816_p12 = pnand %p815_p10, %p814_p2  ;;  %p821_p5 = por %p820_p3, %p819_p0 }
  0x2e   : > { %p817_p13 = pneg %p816_p12 }
  0x30   : > { %p822_p11 = pnand %p821_p5, %p817_p13 }
  0x32   : > { %825 = shalt.err (!%p822_p11)
}
  0x33   : > { %730 = dma.hbm_to_vmem [thread:$0]  (!%p1128_p9), %s265_s13, 128, %s267_s12, %s1140_s14  }
  0x34   : > { %s243_s30 = scalar_lea.hbm %s1282_s0, %s1122_s19  ;;  %s239_s7 = scalar_lea.vmem [#allocation2], %s1126_s20 }
  0x35   : > { %s247_s11 = sshll.u32 %s239_s7, 4  ;;  %s245_s4 = sshll.u32 %s243_s30, 4  ;;  %s248_s11 = int_to_ptr.vmem [resolvable:$true] %s247_s11  ;;  %s246_s4 = int_to_ptr.hbm [resolvable:$true] %s245_s4 }
  0x36   : > { %s1306_s18 = sand.u32 1, %s1005_s23   ;;  %s841_s10 = sshra.s32 %s246_s4, 4  ;;  %s842_s10 = int_to_ptr.hbm [resolvable:$true] %s841_s10 }
  0x37   : > { %s236_s15 = scalar_lea.sflag [#allocation3], %s1306_s18  ;;  %s843_s9 = scalar_lea.hbm %s842_s10, 8 }
  0x38   : > { %p844_p11 = scmp.ne.s32.totalorder %s842_s10, %s843_s9  ;;  %s848_s16 = scalar_lea.hbm %s1282_s0, 16 }
  0x39   : > { %p849_p13 = scmp.lt.s32.totalorder %s842_s10, %s1282_s0  ;;  %p850_p0 = scmp.lt.s32.totalorder %s848_s16, %s843_s9 }
  0x3a   : > { %p846_p2 = pnand %p844_p11, %p815_p10 }
  0x3b   : > { %p851_p3 = por %p850_p0, %p849_p13 }
  0x3c   : > { %p847_p12 = pneg %p846_p2 }
  0x3e   : > { %p852_p5 = pnand %p851_p3, %p847_p12 }
  0x40   : > { %855 = shalt.err (!%p852_p5)
}
  0x41   : > { %727 = dma.hbm_to_vmem [thread:$0]  (!%p1128_p9), %s246_s4, 128, %s248_s11, %s236_s15  }
  0x42   : > { %s281_s18 = scalar_lea.hbm %s1284_s2, %s1122_s19  ;;  %s277_s12 = scalar_lea.vmem [#allocation7], %s1126_s20 }
  0x43   : > { %s285_s13 = sshll.u32 %s277_s12, 4  ;;  %s283_s23 = sshll.u32 %s281_s18, 4  ;;  %s286_s13 = int_to_ptr.vmem [resolvable:$true] %s285_s13  ;;  %s284_s23 = int_to_ptr.hbm [resolvable:$true] %s283_s23 }
  0x44   : > { %s871_s1 = sshra.s32 %s284_s23, 4  ;;  %s878_s11 = scalar_lea.hbm %s1284_s2, 16  ;;  %s872_s1 = int_to_ptr.hbm [resolvable:$true] %s871_s1 }
  0x45   : > { %s873_s10 = scalar_lea.hbm %s872_s1, 8  ;;  %p879_p13 = scmp.lt.s32.totalorder %s872_s1, %s1284_s2 }
  0x46   : > { %p874_p11 = scmp.ne.s32.totalorder %s872_s1, %s873_s10  ;;  %p880_p0 = scmp.lt.s32.totalorder %s878_s11, %s873_s10 }
  0x48   : > { %p876_p2 = pnand %p874_p11, %p815_p10  ;;  %p881_p3 = por %p880_p0, %p879_p13 }
  0x4a   : > { %p877_p12 = pneg %p876_p2 }
  0x4c   : > { %p882_p5 = pnand %p881_p3, %p877_p12 }
  0x4e   : > { %885 = shalt.err (!%p882_p5)
}
  0x4f   : > { %733 = dma.hbm_to_vmem [thread:$0]  (!%p1128_p9), %s284_s23, 128, %s286_s13, %s1140_s14  }
  0x50   : > { %s300_s7 = scalar_lea.hbm %s1285_s3, %s1122_s19  ;;  %s296_s18 = scalar_lea.vmem [#allocation8], %s1126_s20 }
  0x51   : > { %s304_s12 = sshll.u32 %s296_s18, 4  ;;  %s302_s9 = sshll.u32 %s300_s7, 4  ;;  %s305_s12 = int_to_ptr.vmem [resolvable:$true] %s304_s12  ;;  %s303_s9 = int_to_ptr.hbm [resolvable:$true] %s302_s9 }
  0x52   : > { %s1307_s1 = sand.u32 1, %s1009_s24   ;;  %s901_s16 = sshra.s32 %s303_s9, 4  ;;  %s902_s16 = int_to_ptr.hbm [resolvable:$true] %s901_s16 }
  0x53   : > { %s293_s10 = scalar_lea.sflag [#allocation9], %s1307_s1  ;;  %s903_s11 = scalar_lea.hbm %s902_s16, 8 }
  0x54   : > { %p904_p11 = scmp.ne.s32.totalorder %s902_s16, %s903_s11  ;;  %s908_s13 = scalar_lea.hbm %s1285_s3, 16 }
  0x55   : > { %p909_p13 = scmp.lt.s32.totalorder %s902_s16, %s1285_s3  ;;  %p910_p0 = scmp.lt.s32.totalorder %s908_s13, %s903_s11 }
  0x56   : > { %p906_p2 = pnand %p904_p11, %p815_p10 }
  0x57   : > { %p911_p3 = por %p910_p0, %p909_p13 }
  0x58   : > { %p907_p12 = pneg %p906_p2 }
  0x5a   : > { %p912_p5 = pnand %p911_p3, %p907_p12 }
  0x5c   : > { %915 = shalt.err (!%p912_p5)
}
  0x5d   : > { %736 = dma.hbm_to_vmem [thread:$0]  (!%p1128_p9), %s303_s9, 128, %s305_s12, %s293_s10  }
  0x5e   : > { %313 = sbr.rel (%p1092_p8) target bundleno = 256 (0x100), region = 44  ;;  %s1212_s4 = sand.u32 (!%p1092_p8), 1, %s1001_s22  }
  0x5f   : > { %s1215_s15 = sshll.u32 (!%p1092_p8), %s1212_s4, 3  ;;  %s316_s29 = scalar_lea.sflag (!%p1092_p8), [#allocation3], %s1212_s4 }
  0x60   : > { %s319_s30 = scalar_lea.vmem (!%p1092_p8), [#allocation2], %s1215_s15 }
  0x63   : > { %976 = dma.done.wait (%p1079_p4), %s316_s29, 128  }
  0x64   : > { %978 = vsyncadd (%p1079_p4), %s316_s29, 4294967168  ;;  %s325_s8 = sand.u32 1, %s1070_s25   ;;  %s329_s7 = scalar_lea.vmem [#allocation5], %s1215_s15 }
  0x65   : > { %s326_s26 = scalar_lea.sflag [#allocation6], %s325_s8 }
  0x66   : > { %980 = dma.done.wait (%p1079_p4), %s326_s26, 256  }
  0x67   : > { %982 = vsyncadd (%p1079_p4), %s326_s26, 4294967040  ;;  %s339_s18 = scalar_lea.vmem [#allocation7], %s1215_s15  ;;  %s346_s12 = scalar_lea.sflag [#allocation9], %s325_s8 }
  0x68   : > { %s349_s9 = scalar_lea.vmem [#allocation8], %s1215_s15 }
  0x69   : > { %984 = dma.done.wait (%p1079_p4), %s346_s12, 128  }
  0x6a   : > { %986 = vsyncadd (%p1079_p4), %s346_s12, 4294967168 }
  0x6b   : > { %988 = dma.done.wait (%p49_p1), [#allocation9], 1536  }
  0x6c   : > { %990 = vsyncadd (%p49_p1), [#allocation9], 4294965760  ;;  %v408_v0 = vld [vmem:[#allocation10 + $0x38] sm:$0xff]  ;;  %v458_v2 = vld [vmem:[#allocation10 + $0x48] sm:$0xff]  ;;  %vm459_vm0 = vcmask 130048   ;;  %vm409_vm1 = vcmask 261120  }
  0x6d   : > { %v403_v1 = vld [vmem:[#allocation10 + $0x18] sm:$0xff]  ;;  %425 = vmatpush.msra.mxu0 %v408_v0  ;;  %v407_v3 = vld [vmem:[#allocation10 + $0x30] sm:$0xff]  ;;  %v457_v5 = vld [vmem:[#allocation10 + $0x40] sm:$0xff]  ;;  %477 = vmatpush.msra.mxu2 %v458_v2  ;;  %s703_s27 = sshll.u32 %s1070_s25, 3  ;;  %s398_s14 = scalar_lea.vmem [#allocation11], %s1215_s15 }
  0x6e   : > { %448 = vmatpush.msra.mxu1 %v403_v1  ;;  %v402_v4 = vld [vmem:[#allocation10 + $0x10] sm:$0xff]  ;;  %v486_v6 = vld [vmem:[#allocation10 + $0x58] sm:$0xff]  ;;  %v456_v7 = vld [vmem:[%s339_s18] sm:$0xff]  ;;  %s529_s23 = scalar_lea.hbm %s1288_s6, %s703_s27  ;;  %s531_s13 = sshll.u32 %s398_s14, 4  ;;  %s532_s13 = int_to_ptr.vmem [resolvable:$true] %s531_s13 }
  0x6f   : > { %v406_v8 = vld [vmem:[#allocation10 + $0x28] sm:$0xff]  ;;  %426 = vmatpush.msra.mxu0 %v407_v3  ;;  %v485_v10 = vld [vmem:[#allocation10 + $0x50] sm:$0xff]  ;;  %478 = vmatpush.msra.mxu2 %v457_v5  ;;  %v405_v12 = vld [vmem:[#allocation10 + $0x20] sm:$0xff]  ;;  %s533_s19 = sshll.u32 %s529_s23, 4  ;;  %s519_s25 = scalar_lea.sflag [#allocation4], %s1212_s4  ;;  %s534_s19 = int_to_ptr.hbm [resolvable:$true] %s533_s19 }
  0x70   : > { %449 = vmatpush.msra.mxu1 %v402_v4  ;;  %v401_v9 = vld [vmem:[#allocation10 + $0x8] sm:$0xff]  ;;  %504 = vmatpush.msra.mxu3 %v486_v6  ;;  %v484_v11 = vld [vmem:[%s349_s9] sm:$0xff]  ;;  %v400_v13 = vld [vmem:[#allocation10] sm:$0xff]  ;;  %s945_s20 = sshra.s32 %s534_s19, 4  ;;  %s951_s26 = scalar_lea.hbm %s1288_s6, 16  ;;  %s946_s20 = int_to_ptr.hbm [resolvable:$true] %s945_s20 }
  0x71   : > { %700 = vmatmul.msk.f32.vlgmr.msra.gmra.mxu2 %vm459_vm0, %v456_v7  ;;  %427 = vmatpush.msra.mxu0 %v406_v8  ;;  %v404_v14 = vld [vmem:[%s329_s7] sm:$0xff]  ;;  %v399_v15 = vld [vmem:[%s319_s30] sm:$0xff]  ;;  %s947_s29 = scalar_lea.hbm %s946_s20, 8  ;;  %p952_p9 = scmp.lt.s32.totalorder %s946_s20, %s1288_s6 }
  0x72   : > { %450 = vmatpush.msra.mxu1 %v401_v9  ;;  %505 = vmatpush.msra.mxu3 %v485_v10  ;;  %v780_v21 = vld [vmem:[%s1287_s5] ss:$0 sm:$0xff]  ;;  %p948_p1 = scmp.ne.s32.totalorder %s946_s20, %s947_s29  ;;  %p953_p10 = scmp.lt.s32.totalorder %s951_s26, %s947_s29 }
  0x73   : > { %701 = vmatmul.msk.f32.vlgmr.msra.gmra.mxu3 %vm459_vm0, %v484_v11  ;;  %428 = vmatpush.msra.mxu0 %v405_v12 }
  0x74   : > { %451 = vmatpush.msra.mxu1 %v400_v13  ;;  %698 = vmatmul.msk.f32.vlgmr.msra.gmra.mxu0 %vm409_vm1, %v404_v14  ;;  %p949_p4 = pnand %p948_p1, %p1116_p7  ;;  %p954_p11 = por %p953_p10, %p952_p9 }
  0x75   : > { %699 = vmatmul.msk.f32.vlgmr.msra.gmra.mxu1 %vm409_vm1, %v399_v15 }
  0x76   : > { %p950_p8 = pneg %p949_p4 }
  0x78   : > { %p955_p2 = pnand %p954_p11, %p950_p8 }
  0xf1   : > { %v430_v16 = vpop.f32.mrf.mxu0 }
  0xf2   : > { %v453_v17 = vpop.f32.mrf.mxu1 }
  0xf3   : > { %v454_v18 = vadd.f32 %v453_v17, %v430_v16 }
  0xf4   : > { %v480_v19 = vpop.f32.mrf.mxu2 }
  0xf5   : > { %v483_v20 = vadd.f32 %v480_v19, %v454_v18 }
  0xf6   : > { %v507_v22 = vpop.f32.mrf.mxu3 }
  0xf7   : > { %v510_v23 = vadd.f32 %v507_v22, %v483_v20 }
  0xf9   : > { %v515_v24 = vadd.f32 %v780_v21, %v510_v23 }
  0xfb   : > { %v516_v25 = vmax.f32 %v515_v24, 0.0 }
  0xfd   : > { %517 = vst [vmem:[%s398_s14] sm:$0xff] %v516_v25 }
  0xfe   : > { %958 = shalt.err (!%p955_p2)
}
  0xff   : > { %718 = dma.vmem_to_hbm [thread:$0]  (%p1116_p7), %s532_s13, 128, %s534_s19, %s519_s25  }
 0x100 PF: > { %s545_s4 = sand.u32 1, %s997_s21   ;;  %p1308_p12 = scmp.ge.s32.totalorder %s1009_s24, 2 }
 0x101   : > { %s546_s18 = scalar_lea.sflag [#allocation4], %s545_s4 }
 0x102   : > { %p738_p13 = pnand %p1308_p12, %p1084_p6 }
 0x104   : > { %p739_p0 = pneg %p738_p13 }
 0x106   : > { %992 = dma.done.wait (%p739_p0), %s546_s18, 128  }
 0x107   : > { %994 = vsyncadd (%p739_p0), %s546_s18, 4294967168  ;;  %s1309_s24 = sld [smem:[#allocation18_spill]]  ;;  %s1312_s21 = smov %s1001_s22 }
 0x108   : > { %s1310_s12 = sld [smem:[#allocation17_spill]] }
 0x109   : > { %s1311_s23 = sld [smem:[#allocation19_spill]] }
 0x10d   : > { %p25_p3 = scmp.ge.s32.totalorder %s1309_s24, 4  }
 0x10e   : > { %s1313_s22 = smov %s1310_s12 }
 0x10f   :  { %27 = sbr.rel (!%p25_p3) target bundleno = 12 (0xc), region = 130 }
 0x114   :  { %552 = vsyncpa [#allocation3], 1 }
 0x115   :  { %554 = vsyncpa [#allocation3 + $0x1], 1 }
 0x116   :  { %555 = vsyncpa [#allocation6], 1 }
 0x117   :  { %557 = vsyncpa [#allocation6 + $0x1], 1 }
 0x118   :  { %558 = vsyncpa [#allocation9], 1 }
 0x119   :  { %560 = vsyncpa [#allocation9 + $0x1], 1 }
 0x11a   :  { %561 = vsyncpa [#allocation4], 1 }
 0x11b   :  { %563 = vsyncpa [#allocation4 + $0x1], 1 }

</bundles_post_ra>
